<compile_context>
chip_gen: v6e
topology: v6e:2x2x1
jax: 0.10.0
libtpu: 0.0.40
codegen_flags: <defaults>
</compile_context>

<pallas_src>
import jax
import jax.numpy as jnp
from jax.experimental import pallas as pl
from jax.experimental.pallas import tpu as pltpu


def _relu_kernel(x_ref, o_ref):
    # Pure elementwise VPU work on the whole VMEM tile.
    x = x_ref[...]
    o_ref[...] = jnp.maximum(x, jnp.zeros_like(x))


# Widest lane dim that divides n wins (all multiples of the 128-lane vreg).
_LANE_CANDIDATES = (1024, 512, 256, 128)
# ~2 MiB per block: in + out, each double-buffered => ~8 MiB live VMEM.
_TARGET_BLOCK_BYTES = 2 * 1024 * 1024
# Ragged arrays at or below this size are handled as a single full-extent
# block (no pad / no slice); well inside every chip's scoped-VMEM budget.
_SMALL_RAGGED_BYTES = 1 * 1024 * 1024


def _relu_call(x2d, row_tile, lanes, n, itemsize):
    """Common pallas_call builder for a lane-dense 2D slab."""
    rows = x2d.shape[0]
    grid = (pl.cdiv(rows, row_tile),)
    return pl.pallas_call(
        _relu_kernel,
        out_shape=jax.ShapeDtypeStruct((rows, lanes), x2d.dtype),
        grid_spec=pltpu.PrefetchScalarGridSpec(
            num_scalar_prefetch=0,
            grid=grid,
            in_specs=[pl.BlockSpec((row_tile, lanes), lambda i: (i, 0))],
            out_specs=pl.BlockSpec((row_tile, lanes), lambda i: (i, 0)),
        ),
        compiler_params=pltpu.CompilerParams(
            # Parallel so the grid shards across both TensorCores on v7x.
            dimension_semantics=("parallel",),
        ),
        cost_estimate=pl.CostEstimate(
            flops=n,
            transcendentals=0,
            bytes_accessed=2 * n * itemsize,
        ),
    )(x2d)


@jax.jit
def relu_pallas(x: jax.Array) -> jax.Array:
    """ReLU over an arbitrary-shaped array via a Pallas TPU kernel.

    The array is viewed as a lane-dense 2D slab (rows, lanes) with the widest
    lane width that divides the element count, processed in ~2 MiB row tiles
    with a ragged last block, then reshaped back to the original shape.
    Ragged element counts use either a single full-extent block (small) or a
    single 128-lane pad (large).
    """
    orig_shape = x.shape
    itemsize = x.dtype.itemsize

    flat = x.reshape(-1)
    n = flat.shape[0]
    if n == 0:
        return x

    # Fast path: pick the widest lane dim that divides n exactly -> no pad,
    # no post-kernel slice (saves up to two full HBM passes).
    lanes = None
    for cand in _LANE_CANDIDATES:
        if n % cand == 0:
            lanes = cand
            break

    if lanes is not None:
        rows = n // lanes
        x2d = flat.reshape(rows, lanes)
        # Row tile sized for ~_TARGET_BLOCK_BYTES per block. Multiple of 32
        # sublanes covers f32 (8), bf16 (16) and int8/fp8 (32) packing.
        row_tile = max(32, (_TARGET_BLOCK_BYTES // (lanes * itemsize)) // 32 * 32)
        if row_tile >= rows:
            row_tile = rows  # single full-extent block
        out2d = _relu_call(x2d, row_tile, lanes, n, itemsize)
        return out2d.reshape(orig_shape)

    if n * itemsize <= _SMALL_RAGGED_BYTES:
        # Small ragged size: one full-extent (1, n) block. Full array dims are
        # always a legal block shape, so no pad and no post-kernel slice.
        x2d = flat.reshape(1, n)
        out2d = _relu_call(x2d, 1, n, n, itemsize)
        return out2d.reshape(orig_shape)

    # Large ragged size: single pad up to a 128-lane multiple. Zero-padding is
    # benign for ReLU; the pad region is sliced away afterwards.
    lanes = 128
    n_pad = pl.cdiv(n, lanes) * lanes
    flat_p = jnp.pad(flat, (0, n_pad - n))
    rows = n_pad // lanes
    x2d = flat_p.reshape(rows, lanes)
    row_tile = max(32, (_TARGET_BLOCK_BYTES // (lanes * itemsize)) // 32 * 32)
    if row_tile >= rows:
        row_tile = rows
    out2d = _relu_call(x2d, row_tile, lanes, n, itemsize)
    return out2d.reshape(-1)[:n].reshape(orig_shape)


if __name__ == "__main__":
    key = jax.random.PRNGKey(0)

    # Small NCHW batch consistent with a conv-net activation:
    # (N=2, C=4, H=16, W=16) -> 2048 elements (lane-aligned fast path).
    x = jax.random.normal(key, (2, 4, 16, 16), dtype=jnp.float32)
    y = jax.block_until_ready(relu_pallas(x))
    y_ref = jnp.maximum(x, 0.0)
    assert y.shape == x.shape and y.dtype == x.dtype
    assert jnp.array_equal(y, y_ref), "mismatch vs reference ReLU (aligned path)"

    # Ragged size to exercise the small-ragged single-block path.
    key2 = jax.random.split(key)[0]
    x2 = jax.random.normal(key2, (3, 5, 7), dtype=jnp.float32)  # 105 elements
    y2 = jax.block_until_ready(relu_pallas(x2))
    y2_ref = jnp.maximum(x2, 0.0)
    assert y2.shape == x2.shape and y2.dtype == x2.dtype
    assert jnp.array_equal(y2, y2_ref), "mismatch vs reference ReLU (ragged path)"

    print("KERNEL_OK")
</pallas_src>

<mosaic_0001>
module attributes {stable_mosaic.version = 11 : i64} {
  func.func @_relu_kernel(%arg0: i32, %arg1: memref<2x1024xf32, #tpu.memory_space<vmem>>, %arg2: memref<2x1024xf32, #tpu.memory_space<vmem>>) attributes {dimension_semantics = [#tpu.dimension_semantics<parallel>], iteration_bounds = array<i64: 1>, scalar_prefetch = 0 : i64, scratch_operands = 0 : i64, tpu.core_type = #tpu.core_type<tc>, window_params = [{transform_indices = @transform_0, window_bounds = array<i64: 2, 1024>}, {transform_indices = @transform_1, window_bounds = array<i64: 2, 1024>}]} {
    %c0 = arith.constant 0 : index
    %c0_0 = arith.constant 0 : index
    %0 = vector.load %arg1[%c0, %c0_0] : memref<2x1024xf32, #tpu.memory_space<vmem>>, vector<2x1024xf32>
    %cst = arith.constant 0.000000e+00 : f32
    %1 = vector.broadcast %cst : f32 to vector<2x1024xf32>
    %2 = arith.maximumf %0, %1 : vector<2x1024xf32>
    %c0_1 = arith.constant 0 : index
    %c0_2 = arith.constant 0 : index
    %3 = vector.load %arg2[%c0_1, %c0_2] : memref<2x1024xf32, #tpu.memory_space<vmem>>, vector<2x1024xf32>
    tpu.vector_store %arg2[%c0_1, %c0_2], %2 {strides = array<i32>} : memref<2x1024xf32, #tpu.memory_space<vmem>>, vector<2x1024xf32>,
    return
  }
  func.func @transform_0(%arg0: i32) -> (i32, i32) {
    %c0_i32 = arith.constant 0 : i32
    %c0_i32_0 = arith.constant 0 : i32
    return %arg0, %c0_i32 : i32, i32
  }
  func.func @transform_1(%arg0: i32) -> (i32, i32) {
    %c0_i32 = arith.constant 0 : i32
    %c0_i32_0 = arith.constant 0 : i32
    return %arg0, %c0_i32 : i32, i32
  }
}

</mosaic_0001>

<bundles_post_ra>
// kernel: relu_pallas.1
= control target key start
LH: loop header
LB: loop body
LE: loop exit
PB: predicated region body
PF: predicated region fallthrough
CT: control target
= control target key end

     0   :  { %s40_s0 = inlined_call_operand.vmem [shape: f32[2,1024], index: 0, kind: input, shape index: {}]   ;;  %s41_s1 = inlined_call_operand.vmem [shape: f32[2,1024], index: 1, kind: output, shape index: {}]  }
   0x1   :  { %v8_v0 = vld [vmem:[%s40_s0] sm:$0xff]  ;;  %v9_v1 = vld [vmem:[%s40_s0 + $0x8] sm:$0xff] }
   0x2   :  { %v10_v2 = vmax.f32 %v8_v0, 0.0  ;;  %v11_v3 = vmax.f32 %v9_v1, 0.0 }
   0x4   :  { %12 = vst [vmem:[%s41_s1] sm:$0xff] %v10_v2  ;;  %13 = vst [vmem:[%s41_s1 + $0x8] sm:$0xff] %v11_v3 }

</bundles_post_ra>
